<compile_context>
chip_gen: v7x
topology: tpu7x:2x2x1
jax: 0.10.0
libtpu: 0.0.40
codegen_flags: <defaults>
</compile_context>

<pallas_src>
import functools

import jax
import jax.numpy as jnp
from jax.experimental import pallas as pl
from jax.experimental.pallas import tpu as pltpu

_LANE = 512            # lane-dense last dim of the flattened slab (multiple of 128)
_MAX_BLOCK_ROWS = 1024  # 1024 x 512 x 4B = 2 MiB per buffer


def _complex_dropout_kernel(seed_ref, x_ref, o_ref, *, thresh, inv_keep,
                            lanes, block_rows):
    """x_ref / o_ref: (block_rows, lanes) f32 tiles of interleaved [re, im] pairs."""
    # Global coordinates of this tile.
    row0 = pl.program_id(0) * block_rows
    row = jax.lax.broadcasted_iota(jnp.int32, (block_rows, lanes), 0) + row0
    lane = jax.lax.broadcasted_iota(jnp.int32, (block_rows, lanes), 1)

    # One dropout decision per complex element: both halves of an interleaved
    # (re, im) pair map to the same pair index -> identical keep bit.
    pair = ((row * lanes + lane) >> 1).astype(jnp.uint32)

    # Counter-based hash PRNG (portable; works on TPU and in interpret mode).
    h = pair ^ seed_ref[0].astype(jnp.uint32)
    h = (h ^ (h >> 16)) * jnp.uint32(0x7FEB352D)
    h = (h ^ (h >> 15)) * jnp.uint32(0x846CA68B)
    h = h ^ (h >> 16)

    bits24 = (h >> 8).astype(jnp.int32)               # uniform in [0, 2^24)
    keep = (bits24 >= thresh).astype(jnp.float32)     # P(keep) = 1 - p
    scale = keep * jnp.float32(inv_keep)

    # torch: x.imag = x.imag + 1e-10   (imaginary parts live on odd lanes)
    bias = jnp.where((lane & 1) == 1, jnp.float32(1e-10), jnp.float32(0.0))

    # dropout(|x'|) * (cos(angle(x')), sin(angle(x')))  ==  x' * keep/(1-p)
    o_ref[...] = (x_ref[...] + bias) * scale


def _choose_block_rows(rows):
    cap = min(rows, _MAX_BLOCK_ROWS)
    for tr in range(cap, 0, -1):
        if rows % tr == 0 and (tr % 8 == 0 or tr == rows):
            return tr
    return rows


def complex_dropout(x, *, p=0.1, seed=0):
    """Complex dropout (training mode) on a complex64 array of any shape."""
    orig_shape = x.shape

    # Interleaved [re, im] float32 slab.
    slab = jnp.stack((jnp.real(x), jnp.imag(x)), axis=-1).astype(jnp.float32)
    flat = slab.reshape(-1)
    total2 = flat.shape[0]
    pad = (-total2) % _LANE
    if pad:
        flat = jnp.pad(flat, (0, pad))
    rows = (total2 + pad) // _LANE
    block_rows = _choose_block_rows(rows)
    grid = (rows // block_rows,)

    if p >= 1.0:                       # drop everything; avoid 0 * inf = NaN
        thresh = 1 << 24
        inv_keep = 0.0
    else:
        thresh = int(round(max(float(p), 0.0) * (1 << 24)))
        inv_keep = 1.0 / (1.0 - float(p))

    # Mix the seed once on the host; reinterpret as int32 for the SMEM scalar.
    mixed = (int(seed) * 0x9E3779B9) & 0xFFFFFFFF
    if mixed >= (1 << 31):
        mixed -= 1 << 32
    seed_arr = jnp.asarray([mixed], dtype=jnp.int32)

    kernel = functools.partial(
        _complex_dropout_kernel, thresh=thresh, inv_keep=inv_keep,
        lanes=_LANE, block_rows=block_rows)

    slab2d = flat.reshape(rows, _LANE)
    out2d = pl.pallas_call(
        kernel,
        out_shape=jax.ShapeDtypeStruct((rows, _LANE), jnp.float32),
        grid=grid,
        in_specs=[
            pl.BlockSpec(memory_space=pltpu.MemorySpace.SMEM),      # seed scalar
            pl.BlockSpec((block_rows, _LANE), lambda i: (i, 0)),    # input tile
        ],
        out_specs=pl.BlockSpec((block_rows, _LANE), lambda i: (i, 0)),
        compiler_params=pltpu.CompilerParams(
            dimension_semantics=("parallel",)),
        cost_estimate=pl.CostEstimate(
            flops=6 * rows * _LANE,
            transcendentals=0,
            bytes_accessed=2 * rows * _LANE * 4),
    )(seed_arr, slab2d)

    out_flat = out2d.reshape(-1)
    if pad:
        out_flat = out_flat[:total2]
    out_pairs = out_flat.reshape(*orig_shape, 2)
    return jax.lax.complex(out_pairs[..., 0], out_pairs[..., 1]).astype(jnp.complex64)


if __name__ == "__main__":
    key = jax.random.PRNGKey(0)
    kr, ki = jax.random.split(key)
    N, C, H, W = 2, 4, 16, 16
    x = (jax.random.normal(kr, (N, C, H, W), dtype=jnp.float32)
         + 1j * jax.random.normal(ki, (N, C, H, W), dtype=jnp.float32)).astype(jnp.complex64)

    p = 0.1
    out = jax.block_until_ready(complex_dropout(x, p=p, seed=0))

    assert out.shape == x.shape and out.dtype == jnp.complex64

    # Kept elements equal (re + i*(im + 1e-10)) / (1-p); dropped elements are
    # exactly zero in BOTH components (shared mask per complex element).
    expected = (jnp.real(x) + 1j * (jnp.imag(x) + 1e-10)) / (1.0 - p)
    kept = (jnp.real(out) != 0) | (jnp.imag(out) != 0)
    err = jnp.max(jnp.abs(jnp.where(kept, out - expected, 0.0)))
    assert bool(err < 1e-4), f"kept-element mismatch: {err}"
    assert bool(jnp.all(jnp.where(kept, True,
                                  (jnp.real(out) == 0) & (jnp.imag(out) == 0))))
    drop_frac = float(1.0 - jnp.mean(kept.astype(jnp.float32)))
    assert 0.02 <= drop_frac <= 0.25, f"drop fraction {drop_frac} far from p={p}"
    assert bool(jnp.all(jnp.isfinite(jnp.real(out))) and
                jnp.all(jnp.isfinite(jnp.imag(out))))

    print("KERNEL_OK")
</pallas_src>

<mosaic_0001>
module attributes {stable_mosaic.version = 11 : i64} {
  func.func @_complex_dropout_kernel(%arg0: i32, %arg1: memref<1xi32, #tpu.memory_space<smem>>, %arg2: memref<8x512xf32, #tpu.memory_space<vmem>>, %arg3: memref<8x512xf32, #tpu.memory_space<vmem>>) attributes {dimension_semantics = [#tpu.dimension_semantics<parallel>], iteration_bounds = array<i64: 1>, scalar_prefetch = 0 : i64, scratch_operands = 0 : i64, tpu.core_type = #tpu.core_type<tc>, window_params = [{transform_indices = @transform_0, window_bounds = array<i64: 1>}, {transform_indices = @transform_1, window_bounds = array<i64: 8, 512>}, {transform_indices = @transform_2, window_bounds = array<i64: 8, 512>}]} {
    %c8_i32 = arith.constant 8 : i32
    %0 = arith.muli %arg0, %c8_i32 : i32
    %1 = tpu.iota {dimensions = array<i32: 0>} : vector<8x512xi32>
    %2 = vector.broadcast %0 : i32 to vector<8x512xi32>
    %3 = arith.addi %1, %2 : vector<8x512xi32>
    %4 = tpu.iota {dimensions = array<i32: 1>} : vector<8x512xi32>
    %c512_i32 = arith.constant 512 : i32
    %5 = vector.broadcast %c512_i32 : i32 to vector<8x512xi32>
    %6 = arith.muli %3, %5 : vector<8x512xi32>
    %7 = arith.addi %6, %4 : vector<8x512xi32>
    %c1_i32 = arith.constant 1 : i32
    %8 = vector.broadcast %c1_i32 : i32 to vector<8x512xi32>
    %9 = arith.shrsi %7, %8 : vector<8x512xi32>
    %c0 = arith.constant 0 : index
    %10 = memref.load %arg1[%c0] : memref<1xi32, #tpu.memory_space<smem>>
    %11 = vector.broadcast %10 : i32 to vector<8x512xi32>
    %12 = arith.xori %9, %11 : vector<8x512xi32>
    %c16_i32 = arith.constant 16 : i32
    %13 = vector.broadcast %c16_i32 : i32 to vector<8x512xi32>
    %14 = arith.shrui %12, %13 : vector<8x512xi32>
    %15 = arith.xori %12, %14 : vector<8x512xi32>
    %c2146121005_i32 = arith.constant 2146121005 : i32
    %16 = vector.broadcast %c2146121005_i32 : i32 to vector<8x512xi32>
    %17 = arith.muli %15, %16 : vector<8x512xi32>
    %c15_i32 = arith.constant 15 : i32
    %18 = vector.broadcast %c15_i32 : i32 to vector<8x512xi32>
    %19 = arith.shrui %17, %18 : vector<8x512xi32>
    %20 = arith.xori %17, %19 : vector<8x512xi32>
    %c-2073254261_i32 = arith.constant -2073254261 : i32
    %21 = vector.broadcast %c-2073254261_i32 : i32 to vector<8x512xi32>
    %22 = arith.muli %20, %21 : vector<8x512xi32>
    %c16_i32_0 = arith.constant 16 : i32
    %23 = vector.broadcast %c16_i32_0 : i32 to vector<8x512xi32>
    %24 = arith.shrui %22, %23 : vector<8x512xi32>
    %25 = arith.xori %22, %24 : vector<8x512xi32>
    %c8_i32_1 = arith.constant 8 : i32
    %26 = vector.broadcast %c8_i32_1 : i32 to vector<8x512xi32>
    %27 = arith.shrui %25, %26 : vector<8x512xi32>
    %c1677722_i32 = arith.constant 1677722 : i32
    %28 = vector.broadcast %c1677722_i32 : i32 to vector<8x512xi32>
    %29 = arith.cmpi sge, %27, %28 : vector<8x512xi32>
    %30 = arith.extui %29 : vector<8x512xi1> to vector<8x512xi32>
    %31 = arith.sitofp %30 : vector<8x512xi32> to vector<8x512xf32>
    %cst = arith.constant 1.11111116 : f32
    %32 = vector.broadcast %cst : f32 to vector<8x512xf32>
    %33 = arith.mulf %31, %32 : vector<8x512xf32>
    %c1_i32_2 = arith.constant 1 : i32
    %34 = vector.broadcast %c1_i32_2 : i32 to vector<8x512xi32>
    %35 = arith.andi %4, %34 : vector<8x512xi32>
    %c1_i32_3 = arith.constant 1 : i32
    %36 = vector.broadcast %c1_i32_3 : i32 to vector<8x512xi32>
    %37 = arith.cmpi eq, %35, %36 : vector<8x512xi32>
    %cst_4 = arith.constant 1.000000e-10 : f32
    %cst_5 = arith.constant 0.000000e+00 : f32
    %38 = vector.broadcast %cst_4 : f32 to vector<8x512xf32>
    %39 = vector.broadcast %cst_5 : f32 to vector<8x512xf32>
    %40 = arith.select %37, %38, %39 : vector<8x512xi1>, vector<8x512xf32>
    %c0_6 = arith.constant 0 : index
    %c0_7 = arith.constant 0 : index
    %41 = vector.load %arg2[%c0_6, %c0_7] : memref<8x512xf32, #tpu.memory_space<vmem>>, vector<8x512xf32>
    %42 = arith.addf %41, %40 : vector<8x512xf32>
    %43 = arith.mulf %42, %33 : vector<8x512xf32>
    %c0_8 = arith.constant 0 : index
    %c0_9 = arith.constant 0 : index
    %44 = vector.load %arg3[%c0_8, %c0_9] : memref<8x512xf32, #tpu.memory_space<vmem>>, vector<8x512xf32>
    tpu.vector_store %arg3[%c0_8, %c0_9], %43 {strides = array<i32>} : memref<8x512xf32, #tpu.memory_space<vmem>>, vector<8x512xf32>,
    return
  }
  func.func @transform_0(%arg0: i32) -> i32 {
    %c0_i32 = arith.constant 0 : i32
    %c0_i32_0 = arith.constant 0 : i32
    return %c0_i32 : i32
  }
  func.func @transform_1(%arg0: i32) -> (i32, i32) {
    %c0_i32 = arith.constant 0 : i32
    %c0_i32_0 = arith.constant 0 : i32
    return %arg0, %c0_i32 : i32, i32
  }
  func.func @transform_2(%arg0: i32) -> (i32, i32) {
    %c0_i32 = arith.constant 0 : i32
    %c0_i32_0 = arith.constant 0 : i32
    return %arg0, %c0_i32 : i32, i32
  }
}

</mosaic_0001>

<bundles_post_ra>
// kernel: tpu_custom_call.1
= control target key start
LH: loop header
LB: loop body
LE: loop exit
PB: predicated region body
PF: predicated region fallthrough
CT: control target
= control target key end

     0   :  { %8 = vsyncpa [#allocation4], 0  ;;  %s245_s0 = inlined_call_operand.<no memory space> [shape: s32[1], index: 0, kind: input, shape index: {}]   ;;  %s246_s1 = inlined_call_operand.hbm [shape: f32[8,512], index: 1, kind: input, shape index: {}]   ;;  %s247_s2 = inlined_call_operand.hbm [shape: f32[8,512], index: 2, kind: output, shape index: {}]  }
   0x1   :  { %9 = vsyncpa [#allocation5], 0  ;;  %s200_s9 = smov [#allocation3]   ;;  %s152_s13 = scalar_lea.hbm %s246_s1, 512 }
   0x2   :  { %s18_s10 = sshll.u32 %s200_s9, 4  ;;  %p153_p0 = scmp.ne.s32.totalorder %s246_s1, %s152_s13  ;;  %s19_s10 = int_to_ptr.vmem [resolvable:$true] %s18_s10 }
   0x3   :  { %p156_p1 = scmp.lt.u32.totalorder %s152_s13, %s246_s1 }
   0x5   :  { %p158_p2 = pnand %p156_p1, %p153_p0 }
   0x7   :  { %161 = shalt.err (!%p158_p2)
}
   0x8   :  { %s162_s18 = scalar_lea.vmem %s19_s10, 512  ;;  %p167_p4 = scmp.lt.s32.totalorder %s19_s10, %s19_s10 }
   0x9   :  { %p163_p3 = scmp.ne.s32.totalorder %s19_s10, %s162_s18  ;;  %p168_p5 = scmp.lt.s32.totalorder %s162_s18, %s162_s18 }
   0xb   :  { %p169_p6 = por %p168_p5, %p167_p4 }
   0xd   :  { %p170_p7 = pnand %p169_p6, %p163_p3 }
   0xf   :  { %173 = shalt.err (!%p170_p7)
}
  0x10   :  { %21 = dma.hbm_to_vmem [thread:$0]  %s246_s1, 512, %s19_s10, [#allocation4]  }
  0x11   :  { %196 = dma.done.wait [#allocation4], 512  }
  0x12   :  { %197 = vsyncadd [#allocation4], 4294966784  ;;  %v26_v0 = vlaneseq  ;;  %v45_v9 = vstv %s245_s0  ;;  %v201_v53 = vmov 0.0   ;;  %v114_v55 = vld [vmem:[#allocation3] sm:$0xff]  ;;  %v115_v58 = vld [vmem:[#allocation3 + $0x8] sm:$0xff]  ;;  %s202_s0 = smov [#allocation6]  }
  0x13   :  { %v116_v61 = vld [vmem:[#allocation3 + $0x10] sm:$0xff]  ;;  %s136_s1 = sshll.u32 %s202_s0, 4  ;;  %s137_s1 = int_to_ptr.vmem [resolvable:$true] %s136_s1 }
  0x14   :  { %v27_v1 = vshrl.u32 %v26_v0, 7  ;;  %v31_v2 = vand.u32 127, %v26_v0  ;;  %v117_v0 = vld [vmem:[#allocation3 + $0x18] sm:$0xff]  ;;  %s174_s23 = scalar_lea.vmem %s137_s1, 512  ;;  %p179_p9 = scmp.lt.s32.totalorder %s137_s1, %s137_s1 }
  0x15   :  { %p175_p8 = scmp.ne.s32.totalorder %s137_s1, %s174_s23  ;;  %p180_p10 = scmp.lt.s32.totalorder %s174_s23, %s174_s23 }
  0x16   :  { %v35_v3 = vmul.u32 512, %v27_v1  ;;  %v32_v4 = vadd.s32 128, %v31_v2  ;;  %v33_v5 = vadd.s32 256, %v31_v2  ;;  %v34_v6 = vadd.s32 384, %v31_v2 }
  0x17   :  { %v102_v34 = vand.u32 1, %v31_v2  ;;  %p181_p11 = por %p180_p10, %p179_p9 }
  0x18   :  { %v36_v7 = vadd.s32 %v35_v3, %v31_v2  ;;  %v37_v8 = vadd.s32 %v35_v3, %v32_v4  ;;  %v38_v10 = vadd.s32 %v35_v3, %v33_v5  ;;  %v39_v11 = vadd.s32 %v35_v3, %v34_v6 }
  0x19   :  { %v103_v35 = vand.u32 1, %v32_v4  ;;  %v104_v40 = vand.u32 1, %v33_v5  ;;  %v105_v41 = vand.u32 1, %v34_v6  ;;  %vm106_vm0 = vcmp.eq.s32.totalorder %v102_v34, 1  ;;  %p182_p12 = pnand %p181_p11, %p175_p8 }
  0x1a   :  { %v40_v12 = vshra.s32 %v36_v7, 1  ;;  %v41_v13 = vshra.s32 %v37_v8, 1  ;;  %v42_v14 = vshra.s32 %v38_v10, 1  ;;  %v43_v15 = vshra.s32 %v39_v11, 1 }
  0x1b   :  { %vm107_vm1 = vcmp.eq.s32.totalorder %v103_v35, 1  ;;  %vm108_vm2 = vcmp.eq.s32.totalorder %v104_v40, 1  ;;  %vm109_vm3 = vcmp.eq.s32.totalorder %v105_v41, 1  ;;  %v110_v54 = vsel %vm106_vm0, 1e-10, %v201_v53 }
  0x1c   :  { %v46_v16 = vxor.u32 %v45_v9, %v40_v12  ;;  %v47_v17 = vxor.u32 %v45_v9, %v41_v13  ;;  %v48_v18 = vxor.u32 %v45_v9, %v42_v14  ;;  %v49_v19 = vxor.u32 %v45_v9, %v43_v15 }
  0x1d   :  { %v111_v57 = vsel %vm107_vm1, 1e-10, %v201_v53  ;;  %v112_v60 = vsel %vm108_vm2, 1e-10, %v201_v53  ;;  %v113_v63 = vsel %vm109_vm3, 1e-10, %v201_v53  ;;  %v118_v3 = vadd.f32 %v114_v55, %v110_v54 }
  0x1e   :  { %v50_v20 = vshrl.u32 %v46_v16, 16  ;;  %v51_v21 = vshrl.u32 %v47_v17, 16  ;;  %v52_v22 = vshrl.u32 %v48_v18, 16  ;;  %v53_v23 = vshrl.u32 %v49_v19, 16 }
  0x1f   :  { %v119_v4 = vadd.f32 %v115_v58, %v111_v57  ;;  %v120_v7 = vadd.f32 %v116_v61, %v112_v60  ;;  %v121_v8 = vadd.f32 %v117_v0, %v113_v63 }
  0x20   :  { %v54_v24 = vxor.u32 %v50_v20, %v46_v16  ;;  %v55_v25 = vxor.u32 %v51_v21, %v47_v17  ;;  %v56_v26 = vxor.u32 %v52_v22, %v48_v18  ;;  %v57_v27 = vxor.u32 %v53_v23, %v49_v19 }
  0x22   :  { %v58_v28 = vmul.u32 2146121005, %v54_v24  ;;  %v59_v29 = vmul.u32 2146121005, %v55_v25 }
  0x23   :  { %v60_v30 = vmul.u32 2146121005, %v56_v26  ;;  %v61_v31 = vmul.u32 2146121005, %v57_v27 }
  0x24   :  { %v62_v32 = vshrl.u32 %v58_v28, 15  ;;  %v63_v33 = vshrl.u32 %v59_v29, 15 }
  0x25   :  { %v64_v36 = vshrl.u32 %v60_v30, 15  ;;  %v65_v37 = vshrl.u32 %v61_v31, 15 }
  0x26   :  { %v66_v38 = vxor.u32 %v62_v32, %v58_v28  ;;  %v67_v39 = vxor.u32 %v63_v33, %v59_v29 }
  0x27   :  { %v68_v42 = vxor.u32 %v64_v36, %v60_v30  ;;  %v69_v43 = vxor.u32 %v65_v37, %v61_v31 }
  0x28   :  { %v70_v44 = vmul.u32 2221713035, %v66_v38  ;;  %v71_v45 = vmul.u32 2221713035, %v67_v39 }
  0x29   :  { %v72_v46 = vmul.u32 2221713035, %v68_v42  ;;  %v73_v47 = vmul.u32 2221713035, %v69_v43 }
  0x2a   :  { %v74_v48 = vshrl.u32 %v70_v44, 16  ;;  %v75_v49 = vshrl.u32 %v71_v45, 16 }
  0x2b   :  { %v76_v50 = vshrl.u32 %v72_v46, 16  ;;  %v77_v51 = vshrl.u32 %v73_v47, 16 }
  0x2c   :  { %v78_v52 = vxor.u32 %v74_v48, %v70_v44  ;;  %v79_v56 = vxor.u32 %v75_v49, %v71_v45 }
  0x2d   :  { %v80_v59 = vxor.u32 %v76_v50, %v72_v46  ;;  %v81_v62 = vxor.u32 %v77_v51, %v73_v47 }
  0x2e   :  { %v82_v1 = vshrl.u32 %v78_v52, 8  ;;  %v83_v2 = vshrl.u32 %v79_v56, 8 }
  0x2f   :  { %v84_v5 = vshrl.u32 %v80_v59, 8  ;;  %v85_v6 = vshrl.u32 %v81_v62, 8 }
  0x30   :  { %vm86_vm4 = vcmp.ge.s32.totalorder %v82_v1, 1677722  ;;  %vm87_vm5 = vcmp.ge.s32.totalorder %v83_v2, 1677722 }
  0x31   :  { %v145_v9 = vsel %vm86_vm4, 1.0, %v201_v53  ;;  %v146_v10 = vsel %vm87_vm5, 1.0, %v201_v53  ;;  %vm88_vm6 = vcmp.ge.s32.totalorder %v84_v5, 1677722  ;;  %vm89_vm7 = vcmp.ge.s32.totalorder %v85_v6, 1677722 }
  0x32   :  { %v98_v11 = vmul.f32 1.1111112, %v145_v9  ;;  %v99_v12 = vmul.f32 1.1111112, %v146_v10  ;;  %v147_v13 = vsel %vm88_vm6, 1.0, %v201_v53  ;;  %v148_v14 = vsel %vm89_vm7, 1.0, %v201_v53 }
  0x33   :  { %v100_v15 = vmul.f32 1.1111112, %v147_v13  ;;  %v101_v16 = vmul.f32 1.1111112, %v148_v14 }
  0x34   :  { %v122_v17 = vmul.f32 %v118_v3, %v98_v11  ;;  %v123_v18 = vmul.f32 %v119_v4, %v99_v12 }
  0x35   :  { %v124_v19 = vmul.f32 %v120_v7, %v100_v15  ;;  %v125_v20 = vmul.f32 %v121_v8, %v101_v16 }
  0x36   :  { %126 = vst [vmem:[#allocation6] sm:$0xff] %v122_v17  ;;  %127 = vst [vmem:[#allocation6 + $0x8] sm:$0xff] %v123_v18 }
  0x37   :  { %128 = vst [vmem:[#allocation6 + $0x10] sm:$0xff] %v124_v19  ;;  %129 = vst [vmem:[#allocation6 + $0x18] sm:$0xff] %v125_v20 }
  0x38   :  { %185 = shalt.err (!%p182_p12)
}
  0x39   :  { %s186_s26 = scalar_lea.hbm %s247_s2, 512 }
  0x3a   :  { %p187_p13 = scmp.ne.s32.totalorder %s247_s2, %s186_s26  ;;  %p190_p0 = scmp.lt.u32.totalorder %s186_s26, %s247_s2 }
  0x3c   :  { %p192_p1 = pnand %p190_p0, %p187_p13 }
  0x3e   :  { %195 = shalt.err (!%p192_p1)
}
  0x3f   :  { %139 = dma.vmem_to_hbm [thread:$0]  %s137_s1, 512, %s247_s2, [#allocation5]  }
  0x40   :  { %198 = dma.done.wait [#allocation5], 512  }
  0x41   :  { %199 = vsyncadd [#allocation5], 4294966784 }
  0x42   :  { %143 = vsyncpa [#allocation4], 1 }
  0x43   :  { %144 = vsyncpa [#allocation5], 1 }

</bundles_post_ra>
